<compile_context>
chip_gen: v5e
topology: v5e:2x2
jax: 0.10.0
libtpu: 0.0.40
codegen_flags: <defaults>
</compile_context>

<pallas_src>
import math

import jax
import jax.numpy as jnp
from jax.experimental import pallas as pl
from jax.experimental.pallas import tpu as pltpu


def _gelu_new(x):
    # HF "gelu_new": 0.5*x*(1+tanh(sqrt(2/pi)*(x+0.044715*x^3)))  (f32 math)
    c = math.sqrt(2.0 / math.pi)
    return 0.5 * x * (1.0 + jnp.tanh(c * (x + 0.044715 * x * x * x)))


def gpt2_mlp_kernel(x_ref, w_fc_ref, b_fc_ref, w_proj_ref, b_proj_ref, o_ref, acc_ref):
    # Grid: (M/tm, I/ti); axis 1 is the reduction over the intermediate dim.
    # x_ref:      (tm, Hp)   bf16     w_fc_ref:   (Hp, ti) bf16   b_fc_ref: (1, ti) f32
    # w_proj_ref: (ti, Hp)   bf16     b_proj_ref: (1, Hp)  f32
    # o_ref:      (tm, Hp)   out dtype; acc_ref:  (tm, Hp) f32 scratch accumulator
    k = pl.program_id(1)

    @pl.when(k == 0)
    def _():
        acc_ref[...] = jnp.zeros_like(acc_ref)

    # c_fc slice: x @ W_fc[:, k*ti:(k+1)*ti] + b_fc  (bf16 operands, f32 accumulate)
    h = jnp.dot(x_ref[...], w_fc_ref[...], preferred_element_type=jnp.float32)
    h = h + b_fc_ref[...].astype(jnp.float32)

    # gelu_new in f32 (VPU + EUP tanh), then back to the weight dtype for the MXU.
    h = _gelu_new(h).astype(w_proj_ref.dtype)

    # c_proj partial: accumulate h @ W_proj[k*ti:(k+1)*ti, :] into the f32 accumulator.
    acc_ref[...] += jnp.dot(h, w_proj_ref[...], preferred_element_type=jnp.float32)

    @pl.when(k == pl.num_programs(1) - 1)
    def _():
        # TODO(synk): dropout(p=0.1) is identity at inference; training-mode dropout
        # would use pltpu.prng_seed + pltpu.prng_random_bits here.
        o_ref[...] = (acc_ref[...] + b_proj_ref[...].astype(jnp.float32)).astype(o_ref.dtype)


def _round_up(x, m):
    return (x + m - 1) // m * m


def _sublane_multiple(dtype):
    # Packed dtypes need taller minimum sublane tiles: f32->8, bf16->16, 8-bit->32.
    return {4: 8, 2: 16, 1: 32}[jnp.dtype(dtype).itemsize]


def _lane_round(d):
    # Prefer 256-aligned lane dims for the v6e/v7x 2x256x256 MXU; 128 is the hard minimum.
    return _round_up(d, 256) if d >= 256 else _round_up(d, 128)


def gpt2_mlp(hidden_states, w_fc, b_fc, w_proj, b_proj, *,
             tm=512, ti=1024, compute_dtype=jnp.bfloat16,
             vmem_budget_bytes=40 * 1024 * 1024):
    """hidden_states: (B, S, H); w_fc: (H, I); b_fc: (I,); w_proj: (I, H); b_proj: (H,)."""
    B, S, H = hidden_states.shape
    I = w_fc.shape[1]
    M = B * S
    out_dtype = hidden_states.dtype

    sub = _sublane_multiple(compute_dtype)
    cb = jnp.dtype(compute_dtype).itemsize
    ob = jnp.dtype(out_dtype).itemsize

    Hp = _lane_round(H)

    # --- Row tile selection ------------------------------------------------
    tm = max(sub, min(tm, _round_up(M, sub)))
    # v7x megacore: make sure there are >= 2 row tiles when M can be split.
    if _round_up(M, tm) // tm < 2 and M >= 2 * sub:
        tm = _round_up(pl.cdiv(M, 2), sub)

    # --- Intermediate tile selection ----------------------------------------
    ti = min(ti, _lane_round(I))
    if ti >= 256:
        ti = _round_up(ti, 256)

    # --- VMEM budget: double-buffered input tiles + output + f32 accumulator.
    def footprint(tm_, ti_):
        return (2 * (tm_ * Hp * cb            # x tile
                     + Hp * ti_ * cb          # W_fc tile
                     + ti_ * cb               # b_fc tile
                     + ti_ * Hp * cb          # W_proj tile
                     + Hp * cb)               # b_proj
                + 2 * tm_ * Hp * ob           # output tile
                + tm_ * Hp * 4)               # f32 accumulator

    while footprint(tm, ti) > vmem_budget_bytes and ti > 128:
        ti = max(128, _round_up(ti // 2, 128))
    while footprint(tm, ti) > vmem_budget_bytes and tm > sub:
        tm = max(sub, _round_up(tm // 2, sub))

    Mp = _round_up(M, tm)
    Ip = _round_up(I, ti)

    # --- Padding / casting (conditional: skip extra HBM roundtrips if aligned).
    x2 = hidden_states.reshape(M, H).astype(compute_dtype)
    if (Mp, Hp) != (M, H):
        x2 = jnp.pad(x2, ((0, Mp - M), (0, Hp - H)))

    w_fc_p = w_fc.astype(compute_dtype)
    if (Hp, Ip) != (H, I):
        w_fc_p = jnp.pad(w_fc_p, ((0, Hp - H), (0, Ip - I)))
    w_proj_p = w_proj.astype(compute_dtype)
    if (Ip, Hp) != (I, H):
        w_proj_p = jnp.pad(w_proj_p, ((0, Ip - I), (0, Hp - H)))

    b_fc_p = b_fc.reshape(1, I)
    if Ip != I:
        b_fc_p = jnp.pad(b_fc_p, ((0, 0), (0, Ip - I)))
    b_proj_p = b_proj.reshape(1, H)
    if Hp != H:
        b_proj_p = jnp.pad(b_proj_p, ((0, 0), (0, Hp - H)))

    grid = (Mp // tm, Ip // ti)
    n_row_tiles = grid[0]

    # Advisory cost: weights are re-streamed once per M row tile.
    cost = pl.CostEstimate(
        flops=4 * Mp * Hp * Ip,                                   # two matmuls
        transcendentals=Mp * Ip,                                  # tanh in gelu_new
        bytes_accessed=(Mp * Hp * cb + Mp * Hp * ob
                        + n_row_tiles * (Hp * Ip + Ip * Hp) * cb
                        + n_row_tiles * (Ip + Hp) * b_fc.dtype.itemsize),
    )

    out = pl.pallas_call(
        gpt2_mlp_kernel,
        out_shape=jax.ShapeDtypeStruct((Mp, Hp), out_dtype),
        grid_spec=pltpu.PrefetchScalarGridSpec(
            num_scalar_prefetch=0,
            grid=grid,
            in_specs=[
                pl.BlockSpec((tm, Hp), lambda i, k: (i, 0)),   # x row tile
                pl.BlockSpec((Hp, ti), lambda i, k: (0, k)),   # W_fc column tile
                pl.BlockSpec((1, ti), lambda i, k: (0, k)),    # b_fc tile
                pl.BlockSpec((ti, Hp), lambda i, k: (k, 0)),   # W_proj row tile
                pl.BlockSpec((1, Hp), lambda i, k: (0, 0)),    # b_proj
            ],
            out_specs=pl.BlockSpec((tm, Hp), lambda i, k: (i, 0)),
            scratch_shapes=[pltpu.VMEM((tm, Hp), jnp.float32)],
        ),
        compiler_params=pltpu.CompilerParams(
            dimension_semantics=("parallel", "arbitrary"),
            vmem_limit_bytes=50 * 1024 * 1024,
        ),
        cost_estimate=cost,
    )(x2, w_fc_p, b_fc_p, w_proj_p, b_proj_p)

    if (Mp, Hp) != (M, H):
        out = out[:M, :H]
    return out.reshape(B, S, H)


def _reference(hidden_states, w_fc, b_fc, w_proj, b_proj):
    # Pure-f32 reference of the PyTorch module's forward pass.
    h = hidden_states.astype(jnp.float32) @ w_fc.astype(jnp.float32) + b_fc.astype(jnp.float32)
    h = _gelu_new(h)
    y = h @ w_proj.astype(jnp.float32) + b_proj.astype(jnp.float32)
    return y.astype(hidden_states.dtype)


if __name__ == "__main__":
    # Small shapes consistent with GPT2MLP(intermediate_size, hidden_state):
    batch, seq, hidden = 2, 8, 32
    intermediate = 128  # 4 * hidden, GPT-2 convention

    key = jax.random.PRNGKey(0)
    k_x, k_wfc, k_wproj = jax.random.split(key, 3)

    x = jax.random.normal(k_x, (batch, seq, hidden), dtype=jnp.float32)
    # HF Conv1D init: weight ~ N(0, 0.02), bias = 0.  weight shape = (in, out).
    w_fc = 0.02 * jax.random.normal(k_wfc, (hidden, intermediate), dtype=jnp.float32)
    b_fc = jnp.zeros((intermediate,), dtype=jnp.float32)
    w_proj = 0.02 * jax.random.normal(k_wproj, (intermediate, hidden), dtype=jnp.float32)
    b_proj = jnp.zeros((hidden,), dtype=jnp.float32)

    out = gpt2_mlp(x, w_fc, b_fc, w_proj, b_proj)
    out = jax.block_until_ready(out)

    ref = _reference(x, w_fc, b_fc, w_proj, b_proj)
    assert out.shape == (batch, seq, hidden)
    # bf16 MXU path vs f32 reference: tolerance sized for bf16 operand quantization.
    err = float(jnp.max(jnp.abs(out.astype(jnp.float32) - ref.astype(jnp.float32))))
    assert jnp.allclose(out.astype(jnp.float32), ref.astype(jnp.float32),
                        atol=5e-3, rtol=3e-2), err

    print("KERNEL_OK")
</pallas_src>

<mosaic_0001>
module attributes {stable_mosaic.version = 11 : i64} {
  func.func @gpt2_mlp_kernel(%arg0: i32, %arg1: i32, %arg2: memref<16x128xbf16, #tpu.memory_space<vmem>>, %arg3: memref<128x128xbf16, #tpu.memory_space<vmem>>, %arg4: memref<1x128xf32, #tpu.memory_space<vmem>>, %arg5: memref<128x128xbf16, #tpu.memory_space<vmem>>, %arg6: memref<1x128xf32, #tpu.memory_space<vmem>>, %arg7: memref<16x128xf32, #tpu.memory_space<vmem>>, %arg8: memref<16x128xf32, #tpu.memory_space<vmem>>) attributes {dimension_semantics = [#tpu.dimension_semantics<parallel>, #tpu.dimension_semantics<arbitrary>], iteration_bounds = array<i64: 1, 1>, scalar_prefetch = 0 : i64, scratch_operands = 1 : i64, tpu.core_type = #tpu.core_type<tc>, window_params = [{transform_indices = @transform_0, window_bounds = array<i64: 16, 128>}, {transform_indices = @transform_1, window_bounds = array<i64: 128, 128>}, {transform_indices = @transform_2, window_bounds = array<i64: 1, 128>}, {transform_indices = @transform_3, window_bounds = array<i64: 128, 128>}, {pipeline_mode = #tpu.pipeline_mode<synchronous>, transform_indices = @transform_4, window_bounds = array<i64: 1, 128>}, {transform_indices = @transform_5, window_bounds = array<i64: 16, 128>}]} {
    %c0_i32 = arith.constant 0 : i32
    %0 = arith.cmpi eq, %arg1, %c0_i32 : i32
    %1 = arith.extui %0 : i1 to i32
    %c0_i32_0 = arith.constant 0 : i32
    %2 = arith.cmpi ne, %1, %c0_i32_0 : i32
    scf.if %2 {
      %cst_19 = arith.constant 0.000000e+00 : f32
      %31 = vector.broadcast %cst_19 : f32 to vector<16x128xf32>
      %c0_20 = arith.constant 0 : index
      %c0_21 = arith.constant 0 : index
      %32 = vector.load %arg8[%c0_20, %c0_21] : memref<16x128xf32, #tpu.memory_space<vmem>>, vector<16x128xf32>
      tpu.vector_store %arg8[%c0_20, %c0_21], %31 {strides = array<i32>} : memref<16x128xf32, #tpu.memory_space<vmem>>, vector<16x128xf32>,
    } else {
    }
    %c0 = arith.constant 0 : index
    %c0_1 = arith.constant 0 : index
    %3 = vector.load %arg2[%c0, %c0_1] : memref<16x128xbf16, #tpu.memory_space<vmem>>, vector<16x128xbf16>
    %c0_2 = arith.constant 0 : index
    %c0_3 = arith.constant 0 : index
    %4 = vector.load %arg3[%c0_2, %c0_3] : memref<128x128xbf16, #tpu.memory_space<vmem>>, vector<128x128xbf16>
    %cst = arith.constant dense<0.000000e+00> : vector<16x128xf32>
    %5 = tpu.matmul %3, %4, %cst {dimension_numbers = #tpu.dot_dimension_numbers<[1], [0], [0], [1], [0, 0, 1, 1], [], []>} : vector<16x128xbf16>, vector<128x128xbf16>, vector<16x128xf32> -> vector<16x128xf32>
    %c0_4 = arith.constant 0 : index
    %c0_5 = arith.constant 0 : index
    %6 = vector.load %arg4[%c0_4, %c0_5] : memref<1x128xf32, #tpu.memory_space<vmem>>, vector<1x128xf32>
    %7 = vector.broadcast %6 : vector<1x128xf32> to vector<16x128xf32>
    %8 = arith.addf %5, %7 : vector<16x128xf32>
    %cst_6 = arith.constant 5.000000e-01 : f32
    %9 = vector.broadcast %cst_6 : f32 to vector<16x128xf32>
    %10 = arith.mulf %9, %8 : vector<16x128xf32>
    %cst_7 = arith.constant 4.471500e-02 : f32
    %11 = vector.broadcast %cst_7 : f32 to vector<16x128xf32>
    %12 = arith.mulf %11, %8 : vector<16x128xf32>
    %13 = arith.mulf %12, %8 : vector<16x128xf32>
    %14 = arith.mulf %13, %8 : vector<16x128xf32>
    %15 = arith.addf %8, %14 : vector<16x128xf32>
    %cst_8 = arith.constant 0.797884583 : f32
    %16 = vector.broadcast %cst_8 : f32 to vector<16x128xf32>
    %17 = arith.mulf %16, %15 : vector<16x128xf32>
    %18 = math.tanh %17 : vector<16x128xf32>
    %cst_9 = arith.constant 1.000000e+00 : f32
    %19 = vector.broadcast %cst_9 : f32 to vector<16x128xf32>
    %20 = arith.addf %19, %18 : vector<16x128xf32>
    %21 = arith.mulf %10, %20 : vector<16x128xf32>
    %22 = arith.truncf %21 : vector<16x128xf32> to vector<16x128xbf16>
    %c0_10 = arith.constant 0 : index
    %c0_11 = arith.constant 0 : index
    %23 = vector.load %arg8[%c0_10, %c0_11] : memref<16x128xf32, #tpu.memory_space<vmem>>, vector<16x128xf32>
    %c0_12 = arith.constant 0 : index
    %c0_13 = arith.constant 0 : index
    %24 = vector.load %arg5[%c0_12, %c0_13] : memref<128x128xbf16, #tpu.memory_space<vmem>>, vector<128x128xbf16>
    %cst_14 = arith.constant dense<0.000000e+00> : vector<16x128xf32>
    %25 = tpu.matmul %22, %24, %cst_14 {dimension_numbers = #tpu.dot_dimension_numbers<[1], [0], [0], [1], [0, 0, 1, 1], [], []>} : vector<16x128xbf16>, vector<128x128xbf16>, vector<16x128xf32> -> vector<16x128xf32>
    %26 = arith.addf %23, %25 : vector<16x128xf32>
    %c0_15 = arith.constant 0 : index
    %c0_16 = arith.constant 0 : index
    %27 = vector.load %arg8[%c0_15, %c0_16] : memref<16x128xf32, #tpu.memory_space<vmem>>, vector<16x128xf32>
    tpu.vector_store %arg8[%c0_15, %c0_16], %26 {strides = array<i32>} : memref<16x128xf32, #tpu.memory_space<vmem>>, vector<16x128xf32>,
    %c0_i32_17 = arith.constant 0 : i32
    %28 = arith.cmpi eq, %arg1, %c0_i32_17 : i32
    %29 = arith.extui %28 : i1 to i32
    %c0_i32_18 = arith.constant 0 : i32
    %30 = arith.cmpi ne, %29, %c0_i32_18 : i32
    scf.if %30 {
      %c0_19 = arith.constant 0 : index
      %c0_20 = arith.constant 0 : index
      %31 = vector.load %arg8[%c0_19, %c0_20] : memref<16x128xf32, #tpu.memory_space<vmem>>, vector<16x128xf32>
      %c0_21 = arith.constant 0 : index
      %c0_22 = arith.constant 0 : index
      %32 = vector.load %arg6[%c0_21, %c0_22] : memref<1x128xf32, #tpu.memory_space<vmem>>, vector<1x128xf32>
      %33 = vector.broadcast %32 : vector<1x128xf32> to vector<16x128xf32>
      %34 = arith.addf %31, %33 : vector<16x128xf32>
      %c0_23 = arith.constant 0 : index
      %c0_24 = arith.constant 0 : index
      %35 = vector.load %arg7[%c0_23, %c0_24] : memref<16x128xf32, #tpu.memory_space<vmem>>, vector<16x128xf32>
      tpu.vector_store %arg7[%c0_23, %c0_24], %34 {strides = array<i32>} : memref<16x128xf32, #tpu.memory_space<vmem>>, vector<16x128xf32>,
    } else {
    }
    return
  }
  func.func @transform_0(%arg0: i32, %arg1: i32) -> (i32, i32) {
    %c0_i32 = arith.constant 0 : i32
    %c0_i32_0 = arith.constant 0 : i32
    return %arg0, %c0_i32 : i32, i32
  }
  func.func @transform_1(%arg0: i32, %arg1: i32) -> (i32, i32) {
    %c0_i32 = arith.constant 0 : i32
    %c0_i32_0 = arith.constant 0 : i32
    return %c0_i32, %arg1 : i32, i32
  }
  func.func @transform_2(%arg0: i32, %arg1: i32) -> (i32, i32) {
    %c0_i32 = arith.constant 0 : i32
    %c0_i32_0 = arith.constant 0 : i32
    return %c0_i32, %arg1 : i32, i32
  }
  func.func @transform_3(%arg0: i32, %arg1: i32) -> (i32, i32) {
    %c0_i32 = arith.constant 0 : i32
    %c0_i32_0 = arith.constant 0 : i32
    return %arg1, %c0_i32 : i32, i32
  }
  func.func @transform_4(%arg0: i32, %arg1: i32) -> (i32, i32) {
    %c0_i32 = arith.constant 0 : i32
    %c0_i32_0 = arith.constant 0 : i32
    %c0_i32_1 = arith.constant 0 : i32
    return %c0_i32, %c0_i32_0 : i32, i32
  }
  func.func @transform_5(%arg0: i32, %arg1: i32) -> (i32, i32) {
    %c0_i32 = arith.constant 0 : i32
    %c0_i32_0 = arith.constant 0 : i32
    return %arg0, %c0_i32 : i32, i32
  }
}

</mosaic_0001>

<bundles_post_ra>
// kernel: tpu_custom_call.1
= control target key start
LH: loop header
LB: loop body
LE: loop exit
PB: predicated region body
PF: predicated region fallthrough
CT: control target
= control target key end

     0   :  { %10 = vsyncpa [#allocation4], 0  ;;  %s557_s0 = inlined_call_operand.hbm [shape: bf16[16,128], index: 0, kind: input, shape index: {}]   ;;  %s558_s1 = inlined_call_operand.hbm [shape: bf16[128,128], index: 1, kind: input, shape index: {}]   ;;  %s559_s2 = inlined_call_operand.vmem [shape: f32[1,128], index: 2, kind: input, shape index: {}]   ;;  %s560_s3 = inlined_call_operand.hbm [shape: bf16[128,128], index: 3, kind: input, shape index: {}]   ;;  %s561_s4 = inlined_call_operand.vmem [shape: f32[1,128], index: 4, kind: input, shape index: {}]   ;;  %s562_s5 = inlined_call_operand.hbm [shape: f32[16,128], index: 5, kind: output, shape index: {}]  }
   0x1   :  { %11 = vsyncpa [#allocation7], 0 }
   0x2   :  { %12 = vsyncpa [#allocation5], 0  ;;  %s30_s20 = sshll.u32 %s558_s1, 4  ;;  %s501_s21 = smov [#allocation6]   ;;  %s31_s20 = int_to_ptr.hbm [resolvable:$true] %s30_s20 }
   0x3   :  { %s32_s22 = sshll.u32 %s501_s21, 4  ;;  %s17_s25 = sshll.u32 %s557_s0, 4  ;;  %s33_s22 = int_to_ptr.vmem [resolvable:$true] %s32_s22  ;;  %s18_s25 = int_to_ptr.hbm [resolvable:$true] %s17_s25 }
   0x4   :  { %s502_s26 = smov 64   ;;  %s503_s27 = smov 4  }
   0x5   :  { %38 = dma.hbm_to_vmem [thread:$0]  %s31_s20, 1024, %s33_s22, [#allocation7], %s502_s26, %s502_s26, %s503_s27  }
   0x6   :  { %s504_s28 = smov [#allocation3]   ;;  %s45_s7 = sshll.u32 %s560_s3, 4  ;;  %s46_s7 = int_to_ptr.hbm [resolvable:$true] %s45_s7 }
   0x7   :  { %s19_s29 = sshll.u32 %s504_s28, 4  ;;  %s505_s1 = smov [#allocation8]   ;;  %s20_s29 = int_to_ptr.vmem [resolvable:$true] %s19_s29 }
   0x8   :  { %25 = dma.hbm_to_vmem [thread:$0]  %s18_s25, 128, %s20_s29, [#allocation4], %s502_s26, %s502_s26, %s503_s27  }
   0x9   :  { %s47_s8 = sshll.u32 %s505_s1, 4  ;;  %s48_s8 = int_to_ptr.vmem [resolvable:$true] %s47_s8 }
   0xa   :  { %53 = dma.hbm_to_vmem [thread:$0]  %s46_s7, 1024, %s48_s8, [#allocation7], %s502_s26, %s502_s26, %s503_s27  }
   0xb   :  { %495 = dma.done.wait [#allocation4], 128  }
   0xc   :  { %496 = vsyncadd [#allocation4], 4294967168 }
   0xd   :  { %497 = dma.done.wait [#allocation7], 2048  }
   0xe   :  { %498 = vsyncadd [#allocation7], 4294965248  ;;  %v376_v0 = vld [vmem:[#allocation6 + $0x38] sm:$0xff]  ;;  %v375_v1 = vld [vmem:[#allocation6 + $0x30] sm:$0xff]  ;;  %s506_s10 = smov [#allocation9]   ;;  %s286_s14 = sshll.u32 %s562_s5, 4  ;;  %s287_s14 = int_to_ptr.hbm [resolvable:$true] %s286_s14 }
   0xf   :  { %150 = vmatpush.bf16.msra.mxu0 %v376_v0  ;;  %v374_v2 = vld [vmem:[#allocation6 + $0x28] sm:$0xff]  ;;  %v373_v3 = vld [vmem:[#allocation6 + $0x20] sm:$0xff]  ;;  %v372_v4 = vld [vmem:[#allocation6 + $0x18] sm:$0xff]  ;;  %s284_s11 = sshll.u32 %s506_s10, 4  ;;  %s507_s15 = smov 128   ;;  %s285_s11 = int_to_ptr.vmem [resolvable:$true] %s284_s11 }
  0x10   :  { %v371_v5 = vld [vmem:[#allocation6 + $0x10] sm:$0xff]  ;;  %v370_v6 = vld [vmem:[#allocation6 + $0x8] sm:$0xff]  ;;  %v369_v7 = vld [vmem:[#allocation6] sm:$0xff]  ;;  %s508_s16 = smov 8  }
  0x11   :  { %v368_v8 = vld [vmem:[#allocation3] sm:$0xff]  ;;  %v383_v10 = vld [vmem:[#allocation8 + $0x30] sm:$0xff]  ;;  %v382_v11 = vld [vmem:[#allocation8 + $0x28] sm:$0xff] }
  0x12   :  { %v384_v9 = vld [vmem:[#allocation8 + $0x38] sm:$0xff]  ;;  %v381_v12 = vld [vmem:[#allocation8 + $0x20] sm:$0xff]  ;;  %v379_v14 = vld [vmem:[#allocation8 + $0x10] sm:$0xff] }
  0x13   :  { %151 = vmatpush.bf16.msra.mxu0 %v375_v1  ;;  %249 = vmatpush.bf16.msra.mxu1 %v384_v9  ;;  %v380_v13 = vld [vmem:[#allocation8 + $0x18] sm:$0xff]  ;;  %v378_v15 = vld [vmem:[#allocation8 + $0x8] sm:$0xff]  ;;  %v377_v16 = vld [vmem:[#allocation8] sm:$0xff] }
  0x14   :  { %v393_v17 = vld [vmem:[%s559_s2] ss:$0 sm:$0xff] }
  0x15   :  { %v394_v41 = vld [vmem:[%s561_s4] ss:$0 sm:$0xff] }
  0x17   :  { %152 = vmatpush.bf16.msra.mxu0 %v374_v2  ;;  %250 = vmatpush.bf16.msra.mxu1 %v383_v10 }
  0x1b   :  { %153 = vmatpush.bf16.msra.mxu0 %v373_v3  ;;  %251 = vmatpush.bf16.msra.mxu1 %v382_v11 }
  0x1f   :  { %154 = vmatpush.bf16.msra.mxu0 %v372_v4  ;;  %252 = vmatpush.bf16.msra.mxu1 %v381_v12 }
  0x23   :  { %155 = vmatpush.bf16.msra.mxu0 %v371_v5  ;;  %253 = vmatpush.bf16.msra.mxu1 %v380_v13 }
  0x27   :  { %156 = vmatpush.bf16.msra.mxu0 %v370_v6  ;;  %254 = vmatpush.bf16.msra.mxu1 %v379_v14 }
  0x2b   :  { %157 = vmatpush.bf16.msra.mxu0 %v369_v7  ;;  %255 = vmatpush.bf16.msra.mxu1 %v378_v15 }
  0x2e   :  { %158 = vmatmul.bf16.vlgmr.msra.gmra.mxu0 %v368_v8 }
  0x2f   :  { %256 = vmatpush.bf16.msra.mxu1 %v377_v16 }
  0xab   :  { %v159_v18 = vpop.f32.mrf.mxu0 }
  0xac   :  { %v160_v19 = vadd.f32 %v393_v17, %v159_v18 }
  0xae   :  { %v166_v20 = vmul.f32 0.044715, %v160_v19  ;;  %v164_v35 = vmul.f32 0.5, %v160_v19 }
  0xb0   :  { %v168_v21 = vmul.f32 %v166_v20, %v160_v19 }
  0xb2   :  { %v170_v22 = vmul.f32 %v168_v21, %v160_v19 }
  0xb3   :  { %v161_v23 = vpop.f32.mrf.mxu0 }
  0xb4   :  { %v162_v24 = vadd.f32 %v393_v17, %v161_v23  ;;  %v172_v25 = vadd.f32 %v170_v22, %v160_v19 }
  0xb6   :  { %v167_v26 = vmul.f32 0.044715, %v162_v24  ;;  %v174_v28 = vmul.f32 0.7978846, %v172_v25  ;;  %v165_v36 = vmul.f32 0.5, %v162_v24 }
  0xb8   :  { %v169_v27 = vmul.f32 %v167_v26, %v162_v24  ;;  %395 = vtanh.f32 %v174_v28 }
  0xba   :  { %v171_v29 = vmul.f32 %v169_v27, %v162_v24 }
  0xbc   :  { %v173_v30 = vadd.f32 %v171_v29, %v162_v24 }
  0xbe   :  { %v175_v31 = vmul.f32 0.7978846, %v173_v30  ;;  %v396_v32 = vpop.eup %395 }
  0xbf   :  { %v178_v33 = vadd.f32 1.0, %v396_v32 }
  0xc0   :  { %397 = vtanh.f32 %v175_v31 }
  0xc1   :  { %v180_v38 = vmul.f32 %v178_v33, %v164_v35 }
  0xc6   :  { %v398_v34 = vpop.eup %397 }
  0xc7   :  { %v179_v37 = vadd.f32 1.0, %v398_v34 }
  0xc9   :  { %v181_v39 = vmul.f32 %v179_v37, %v165_v36 }
  0xcb   :  { %v182_v40 = vpack.c.bf16 %v181_v39, %v180_v38 }
  0xcd   :  { %257 = vmatmul.bf16.vlgmr.msra.gmra.mxu1 %v182_v40 }
 0x14a   :  { %v258_v42 = vpop.f32.mrf.mxu1 }
 0x14b   :  { %v276_v43 = vadd.f32 %v394_v41, %v258_v42 }
 0x14d   :  { %278 = vst [vmem:[#allocation9] sm:$0xff] %v276_v43 }
 0x152   :  { %v260_v44 = vpop.f32.mrf.mxu1 }
 0x153   :  { %v277_v45 = vadd.f32 %v394_v41, %v260_v44 }
 0x155   :  { %279 = vst [vmem:[#allocation9 + $0x8] sm:$0xff] %v277_v45 }
 0x156   :  { %292 = dma.vmem_to_hbm [thread:$0]  %s285_s11, 256, %s287_s14, [#allocation5], %s507_s15, %s507_s15, %s508_s16  }
 0x157   :  { %499 = dma.done.wait [#allocation5], 256  }
 0x158   :  { %500 = vsyncadd [#allocation5], 4294967040 }
 0x159   :  { %297 = vsyncpa [#allocation4], 1 }
 0x15a   :  { %298 = vsyncpa [#allocation7], 1 }
 0x15b   :  { %299 = vsyncpa [#allocation5], 1 }

</bundles_post_ra>
